<compile_context>
chip_gen: v7x
topology: tpu7x:2x2x1
jax: 0.10.0
libtpu: 0.0.40
codegen_flags: <defaults>
</compile_context>

<pallas_src>
import jax
import jax.numpy as jnp
from jax.experimental import pallas as pl
from jax.experimental.pallas import tpu as pltpu


def resmlp_layer_kernel(
    x_ref,      # (TB*P, F)   flat activations for this batch block
    vecs_ref,   # (6, F)      [cl_a1, cl_b1, cl_a2, ff_a1, ff_b1, ff_b2']
    clw_ref,    # (TB*P, TB*P) block-diagonal token-mix weight kron(I_TB, W)
    clb_ref,    # (TB*P, F)   folded comm-layer bias (a2*fc1_b + b2, tiled)
    w1_ref,     # (F, H)      ff fc1.weight^T
    b1_ref,     # (1, H)      ff fc1.bias
    w2_ref,     # (H, F)      ff fc2.weight^T * ff_a2   (aff2 folded in)
    out_ref,    # (TB*P, F)
):
    x = x_ref[...]

    cl_a1 = vecs_ref[0:1, :]
    cl_b1 = vecs_ref[1:2, :]
    cl_a2 = vecs_ref[2:3, :]
    ff_a1 = vecs_ref[3:4, :]
    ff_b1 = vecs_ref[4:5, :]
    ff_b2 = vecs_ref[5:6, :]

    # ---- CommunicationLayer ----
    x1 = cl_a1 * x + cl_b1                                    # aff1
    # Token mixing for the whole batch block as one MXU matmul.
    mixed = jnp.dot(clw_ref[...], x1,
                    preferred_element_type=jnp.float32)       # (TB*P, F)
    xc = cl_a2 * mixed + clb_ref[...] + x1                    # aff2 (bias folded) + residual

    # ---- FeedForward ----
    x3 = ff_a1 * xc + ff_b1                                   # aff1
    h = jnp.dot(x3, w1_ref[...],
                preferred_element_type=jnp.float32) + b1_ref[...]
    # Exact (erf-based) GELU, matching torch.nn.functional.gelu default.
    h = 0.5 * h * (1.0 + jax.lax.erf(h * 0.7071067811865476))
    o = jnp.dot(h, w2_ref[...],
                preferred_element_type=jnp.float32) + ff_b2   # aff2 folded into W2', b2'
    out_ref[...] = (o + x3).astype(out_ref.dtype)


def _pick_batch_block(batch, num_patches, max_rows=512):
    """Largest divisor of `batch` keeping the per-step row count <= max_rows."""
    tb = 1
    for cand in range(1, batch + 1):
        if batch % cand == 0 and cand * num_patches <= max_rows:
            tb = cand
    return tb


def prepare_params(raw, batch_block):
    """One-time constant transform of PyTorch-shaped params into kernel form."""
    dt = raw["cl_fc1_w"].dtype
    # Block-diagonal token-mix weight for the flat (TB*P, F) activation slab.
    clw_blk = jnp.kron(jnp.eye(batch_block, dtype=dt), raw["cl_fc1_w"])
    # Fold the comm-layer aff2 into a 2-D bias: a2[f]*fc1_b[p] + b2[f].
    clb2d = (raw["cl_alpha2"][None, :] * raw["cl_fc1_b"][:, None]
             + raw["cl_beta2"][None, :])                      # (P, F)
    clb = jnp.tile(clb2d, (batch_block, 1))                   # (TB*P, F)
    # Fold the feed-forward aff2 into fc2's weight / bias.
    w2s = raw["ff_fc2_w"].T * raw["ff_alpha2"][None, :]       # (H, F)
    b2f = raw["ff_alpha2"] * raw["ff_fc2_b"] + raw["ff_beta2"]  # (F,)
    # Pack all remaining (1, F) affine vectors into one stacked array.
    vecs = jnp.stack(
        [raw["cl_alpha1"], raw["cl_beta1"], raw["cl_alpha2"],
         raw["ff_alpha1"], raw["ff_beta1"], b2f], axis=0)     # (6, F)
    return {
        "batch_block": batch_block,
        "vecs": vecs,
        "clw_blk": clw_blk,
        "clb": clb,
        "w1t": raw["ff_fc1_w"].T,          # (F, H)
        "b1": raw["ff_fc1_b"][None, :],    # (1, H)
        "w2s": w2s,                        # (H, F)
    }


def resmlp_layer(x, prep):
    """x: (B, P, F) float32. prep: output of prepare_params()."""
    B, P, F = x.shape
    TB = prep["batch_block"]
    assert B % TB == 0, "batch_block must divide batch"
    rows = TB * P
    grid_len = B // TB
    assert rows % 8 == 0 or grid_len == 1, "per-step rows must be sublane aligned"
    H = prep["w1t"].shape[1]

    # Flat (B*P, F) view so the whole batch block is one contiguous 2-D slab.
    x2d = x.reshape(B * P, F)

    cost = pl.CostEstimate(
        flops=int(2 * B * P * (rows * F + 2 * F * H)),
        transcendentals=int(B * P * H),
        bytes_accessed=int(4 * (2 * B * P * F + 6 * F + rows * rows
                                + rows * F + 2 * F * H + H)),
    )

    out2d = pl.pallas_call(
        resmlp_layer_kernel,
        out_shape=jax.ShapeDtypeStruct((B * P, F), x.dtype),
        grid_spec=pltpu.PrefetchScalarGridSpec(
            num_scalar_prefetch=0,
            grid=(grid_len,),
            in_specs=[
                pl.BlockSpec((rows, F), lambda i: (i, 0)),     # x slab
                pl.BlockSpec((6, F), lambda i: (0, 0)),        # packed affine vectors
                pl.BlockSpec((rows, rows), lambda i: (0, 0)),  # block-diag token-mix W
                pl.BlockSpec((rows, F), lambda i: (0, 0)),     # folded comm bias
                pl.BlockSpec((F, H), lambda i: (0, 0)),        # fc1 weight^T
                pl.BlockSpec((1, H), lambda i: (0, 0)),        # fc1 bias
                pl.BlockSpec((H, F), lambda i: (0, 0)),        # fc2 weight^T * a2
            ],
            out_specs=pl.BlockSpec((rows, F), lambda i: (i, 0)),
        ),
        compiler_params=pltpu.CompilerParams(
            dimension_semantics=("parallel",),
            vmem_limit_bytes=32 * 1024 * 1024,
        ),
        cost_estimate=cost,
    )(x2d, prep["vecs"], prep["clw_blk"], prep["clb"],
      prep["w1t"], prep["b1"], prep["w2s"])

    return out2d.reshape(B, P, F)


def resmlp_layer_ref(x, p):
    """Pure-JAX reference matching the PyTorch forward exactly."""
    # CommunicationLayer
    x1 = p["cl_alpha1"] * x + p["cl_beta1"]
    mixed = (jnp.einsum("pq,bqf->bpf", p["cl_fc1_w"], x1)
             + p["cl_fc1_b"][None, :, None])
    xc = p["cl_alpha2"] * mixed + p["cl_beta2"] + x1
    # FeedForward
    x3 = p["ff_alpha1"] * xc + p["ff_beta1"]
    h = jnp.einsum("bpf,hf->bph", x3, p["ff_fc1_w"]) + p["ff_fc1_b"]
    h = 0.5 * h * (1.0 + jax.lax.erf(h / jnp.sqrt(2.0)))
    o = jnp.einsum("bph,fh->bpf", h, p["ff_fc2_w"]) + p["ff_fc2_b"]
    o = p["ff_alpha2"] * o + p["ff_beta2"]
    return o + x3


def make_raw_params(key, num_features, num_patches, expansion_factor):
    """PyTorch-shaped parameters (Linear stores weight as (out, in))."""
    F_, P_ = num_features, num_patches
    H_ = F_ * expansion_factor
    ks = jax.random.split(key, 14)
    s = 0.05
    return {
        # CommunicationLayer
        "cl_alpha1": 1.0 + s * jax.random.normal(ks[0], (F_,), jnp.float32),
        "cl_beta1": s * jax.random.normal(ks[1], (F_,), jnp.float32),
        "cl_fc1_w": s * jax.random.normal(ks[2], (P_, P_), jnp.float32),
        "cl_fc1_b": s * jax.random.normal(ks[3], (P_,), jnp.float32),
        "cl_alpha2": 1.0 + s * jax.random.normal(ks[4], (F_,), jnp.float32),
        "cl_beta2": s * jax.random.normal(ks[5], (F_,), jnp.float32),
        # FeedForward
        "ff_alpha1": 1.0 + s * jax.random.normal(ks[6], (F_,), jnp.float32),
        "ff_beta1": s * jax.random.normal(ks[7], (F_,), jnp.float32),
        "ff_fc1_w": s * jax.random.normal(ks[8], (H_, F_), jnp.float32),
        "ff_fc1_b": s * jax.random.normal(ks[9], (H_,), jnp.float32),
        "ff_fc2_w": s * jax.random.normal(ks[10], (F_, H_), jnp.float32),
        "ff_fc2_b": s * jax.random.normal(ks[11], (F_,), jnp.float32),
        "ff_alpha2": 1.0 + s * jax.random.normal(ks[12], (F_,), jnp.float32),
        "ff_beta2": s * jax.random.normal(ks[13], (F_,), jnp.float32),
    }


if __name__ == "__main__":
    # Small shapes consistent with the module: x is (batch, num_patches, num_features)
    B, P, F, EXP = 2, 8, 32, 4

    key = jax.random.PRNGKey(0)
    kx, kp = jax.random.split(key)
    x = jax.random.normal(kx, (B, P, F), jnp.float32)
    raw = make_raw_params(kp, F, P, EXP)

    TB = _pick_batch_block(B, P)           # -> 2 here (whole batch per step)
    prep = prepare_params(raw, TB)

    out = resmlp_layer(x, prep)
    out = jax.block_until_ready(out)

    ref = resmlp_layer_ref(x, raw)
    assert out.shape == (B, P, F)
    # Folding aff2 into fc2's weights changes which operands get rounded on
    # the MXU (default f32 matmul precision uses bf16 passes), so differences
    # at the ~1e-3 level are expected; a real bug would be >> 1e-2.
    max_diff = float(jnp.max(jnp.abs(out - ref)))
    assert jnp.allclose(out, ref, atol=1e-2, rtol=1e-2), (
        f"mismatch vs reference: max abs diff = {max_diff}")

    print("KERNEL_OK")
</pallas_src>

<mosaic_0001>
module attributes {stable_mosaic.version = 11 : i64} {
  func.func @resmlp_layer_kernel(%arg0: i32, %arg1: memref<16x32xf32, #tpu.memory_space<vmem>>, %arg2: memref<6x32xf32, #tpu.memory_space<vmem>>, %arg3: memref<16x16xf32, #tpu.memory_space<vmem>>, %arg4: memref<16x32xf32, #tpu.memory_space<vmem>>, %arg5: memref<32x128xf32, #tpu.memory_space<vmem>>, %arg6: memref<1x128xf32, #tpu.memory_space<vmem>>, %arg7: memref<128x32xf32, #tpu.memory_space<vmem>>, %arg8: memref<16x32xf32, #tpu.memory_space<vmem>>) attributes {dimension_semantics = [#tpu.dimension_semantics<parallel>], iteration_bounds = array<i64: 1>, scalar_prefetch = 0 : i64, scratch_operands = 0 : i64, tpu.core_type = #tpu.core_type<tc>, window_params = [{transform_indices = @transform_0, window_bounds = array<i64: 16, 32>}, {pipeline_mode = #tpu.pipeline_mode<synchronous>, transform_indices = @transform_1, window_bounds = array<i64: 6, 32>}, {pipeline_mode = #tpu.pipeline_mode<synchronous>, transform_indices = @transform_2, window_bounds = array<i64: 16, 16>}, {pipeline_mode = #tpu.pipeline_mode<synchronous>, transform_indices = @transform_3, window_bounds = array<i64: 16, 32>}, {pipeline_mode = #tpu.pipeline_mode<synchronous>, transform_indices = @transform_4, window_bounds = array<i64: 32, 128>}, {pipeline_mode = #tpu.pipeline_mode<synchronous>, transform_indices = @transform_5, window_bounds = array<i64: 1, 128>}, {pipeline_mode = #tpu.pipeline_mode<synchronous>, transform_indices = @transform_6, window_bounds = array<i64: 128, 32>}, {transform_indices = @transform_7, window_bounds = array<i64: 16, 32>}]} {
    %c0 = arith.constant 0 : index
    %c0_0 = arith.constant 0 : index
    %0 = vector.load %arg1[%c0, %c0_0] : memref<16x32xf32, #tpu.memory_space<vmem>>, vector<16x32xf32>
    %c0_1 = arith.constant 0 : index
    %c0_2 = arith.constant 0 : index
    %1 = vector.load %arg2[%c0_1, %c0_2] : memref<6x32xf32, #tpu.memory_space<vmem>>, vector<1x32xf32>
    %c1 = arith.constant 1 : index
    %c0_3 = arith.constant 0 : index
    %2 = vector.load %arg2[%c1, %c0_3] : memref<6x32xf32, #tpu.memory_space<vmem>>, vector<1x32xf32>
    %c2 = arith.constant 2 : index
    %c0_4 = arith.constant 0 : index
    %3 = vector.load %arg2[%c2, %c0_4] : memref<6x32xf32, #tpu.memory_space<vmem>>, vector<1x32xf32>
    %c3 = arith.constant 3 : index
    %c0_5 = arith.constant 0 : index
    %4 = vector.load %arg2[%c3, %c0_5] : memref<6x32xf32, #tpu.memory_space<vmem>>, vector<1x32xf32>
    %c4 = arith.constant 4 : index
    %c0_6 = arith.constant 0 : index
    %5 = vector.load %arg2[%c4, %c0_6] : memref<6x32xf32, #tpu.memory_space<vmem>>, vector<1x32xf32>
    %c5 = arith.constant 5 : index
    %c0_7 = arith.constant 0 : index
    %6 = vector.load %arg2[%c5, %c0_7] : memref<6x32xf32, #tpu.memory_space<vmem>>, vector<1x32xf32>
    %7 = vector.broadcast %1 : vector<1x32xf32> to vector<16x32xf32>
    %8 = arith.mulf %7, %0 : vector<16x32xf32>
    %9 = vector.broadcast %2 : vector<1x32xf32> to vector<16x32xf32>
    %10 = arith.addf %8, %9 : vector<16x32xf32>
    %c0_8 = arith.constant 0 : index
    %c0_9 = arith.constant 0 : index
    %11 = vector.load %arg3[%c0_8, %c0_9] : memref<16x16xf32, #tpu.memory_space<vmem>>, vector<16x16xf32>
    %cst = arith.constant dense<0.000000e+00> : vector<16x32xf32>
    %12 = tpu.matmul %11, %10, %cst {dimension_numbers = #tpu.dot_dimension_numbers<[1], [0], [0], [1], [0, 0, 1, 1], [], []>} : vector<16x16xf32>, vector<16x32xf32>, vector<16x32xf32> -> vector<16x32xf32>
    %13 = vector.broadcast %3 : vector<1x32xf32> to vector<16x32xf32>
    %14 = arith.mulf %13, %12 : vector<16x32xf32>
    %c0_10 = arith.constant 0 : index
    %c0_11 = arith.constant 0 : index
    %15 = vector.load %arg4[%c0_10, %c0_11] : memref<16x32xf32, #tpu.memory_space<vmem>>, vector<16x32xf32>
    %16 = arith.addf %14, %15 : vector<16x32xf32>
    %17 = arith.addf %16, %10 : vector<16x32xf32>
    %18 = vector.broadcast %4 : vector<1x32xf32> to vector<16x32xf32>
    %19 = arith.mulf %18, %17 : vector<16x32xf32>
    %20 = vector.broadcast %5 : vector<1x32xf32> to vector<16x32xf32>
    %21 = arith.addf %19, %20 : vector<16x32xf32>
    %c0_12 = arith.constant 0 : index
    %c0_13 = arith.constant 0 : index
    %22 = vector.load %arg5[%c0_12, %c0_13] : memref<32x128xf32, #tpu.memory_space<vmem>>, vector<32x128xf32>
    %cst_14 = arith.constant dense<0.000000e+00> : vector<16x128xf32>
    %23 = tpu.matmul %21, %22, %cst_14 {dimension_numbers = #tpu.dot_dimension_numbers<[1], [0], [0], [1], [0, 0, 1, 1], [], []>} : vector<16x32xf32>, vector<32x128xf32>, vector<16x128xf32> -> vector<16x128xf32>
    %c0_15 = arith.constant 0 : index
    %c0_16 = arith.constant 0 : index
    %24 = vector.load %arg6[%c0_15, %c0_16] : memref<1x128xf32, #tpu.memory_space<vmem>>, vector<1x128xf32>
    %25 = vector.broadcast %24 : vector<1x128xf32> to vector<16x128xf32>
    %26 = arith.addf %23, %25 : vector<16x128xf32>
    %cst_17 = arith.constant 5.000000e-01 : f32
    %27 = vector.broadcast %cst_17 : f32 to vector<16x128xf32>
    %28 = arith.mulf %27, %26 : vector<16x128xf32>
    %cst_18 = arith.constant 0.707106769 : f32
    %29 = vector.broadcast %cst_18 : f32 to vector<16x128xf32>
    %30 = arith.mulf %26, %29 : vector<16x128xf32>
    %31 = math.erf %30 : vector<16x128xf32>
    %cst_19 = arith.constant 1.000000e+00 : f32
    %32 = vector.broadcast %cst_19 : f32 to vector<16x128xf32>
    %33 = arith.addf %32, %31 : vector<16x128xf32>
    %34 = arith.mulf %28, %33 : vector<16x128xf32>
    %c0_20 = arith.constant 0 : index
    %c0_21 = arith.constant 0 : index
    %35 = vector.load %arg7[%c0_20, %c0_21] : memref<128x32xf32, #tpu.memory_space<vmem>>, vector<128x32xf32>
    %cst_22 = arith.constant dense<0.000000e+00> : vector<16x32xf32>
    %36 = tpu.matmul %34, %35, %cst_22 {dimension_numbers = #tpu.dot_dimension_numbers<[1], [0], [0], [1], [0, 0, 1, 1], [], []>} : vector<16x128xf32>, vector<128x32xf32>, vector<16x32xf32> -> vector<16x32xf32>
    %37 = vector.broadcast %6 : vector<1x32xf32> to vector<16x32xf32>
    %38 = arith.addf %36, %37 : vector<16x32xf32>
    %39 = arith.addf %38, %21 : vector<16x32xf32>
    %c0_23 = arith.constant 0 : index
    %c0_24 = arith.constant 0 : index
    %40 = vector.load %arg8[%c0_23, %c0_24] : memref<16x32xf32, #tpu.memory_space<vmem>>, vector<16x32xf32>
    tpu.vector_store %arg8[%c0_23, %c0_24], %39 {strides = array<i32>} : memref<16x32xf32, #tpu.memory_space<vmem>>, vector<16x32xf32>,
    return
  }
  func.func @transform_0(%arg0: i32) -> (i32, i32) {
    %c0_i32 = arith.constant 0 : i32
    %c0_i32_0 = arith.constant 0 : i32
    return %arg0, %c0_i32 : i32, i32
  }
  func.func @transform_1(%arg0: i32) -> (i32, i32) {
    %c0_i32 = arith.constant 0 : i32
    %c0_i32_0 = arith.constant 0 : i32
    %c0_i32_1 = arith.constant 0 : i32
    return %c0_i32, %c0_i32_0 : i32, i32
  }
  func.func @transform_2(%arg0: i32) -> (i32, i32) {
    %c0_i32 = arith.constant 0 : i32
    %c0_i32_0 = arith.constant 0 : i32
    %c0_i32_1 = arith.constant 0 : i32
    return %c0_i32, %c0_i32_0 : i32, i32
  }
  func.func @transform_3(%arg0: i32) -> (i32, i32) {
    %c0_i32 = arith.constant 0 : i32
    %c0_i32_0 = arith.constant 0 : i32
    %c0_i32_1 = arith.constant 0 : i32
    return %c0_i32, %c0_i32_0 : i32, i32
  }
  func.func @transform_4(%arg0: i32) -> (i32, i32) {
    %c0_i32 = arith.constant 0 : i32
    %c0_i32_0 = arith.constant 0 : i32
    %c0_i32_1 = arith.constant 0 : i32
    return %c0_i32, %c0_i32_0 : i32, i32
  }
  func.func @transform_5(%arg0: i32) -> (i32, i32) {
    %c0_i32 = arith.constant 0 : i32
    %c0_i32_0 = arith.constant 0 : i32
    %c0_i32_1 = arith.constant 0 : i32
    return %c0_i32, %c0_i32_0 : i32, i32
  }
  func.func @transform_6(%arg0: i32) -> (i32, i32) {
    %c0_i32 = arith.constant 0 : i32
    %c0_i32_0 = arith.constant 0 : i32
    %c0_i32_1 = arith.constant 0 : i32
    return %c0_i32, %c0_i32_0 : i32, i32
  }
  func.func @transform_7(%arg0: i32) -> (i32, i32) {
    %c0_i32 = arith.constant 0 : i32
    %c0_i32_0 = arith.constant 0 : i32
    return %arg0, %c0_i32 : i32, i32
  }
}

</mosaic_0001>

<bundles_post_ra>
// kernel: tpu_custom_call.1
= control target key start
LH: loop header
LB: loop body
LE: loop exit
PB: predicated region body
PF: predicated region fallthrough
CT: control target
= control target key end

     0   :  { %vm49_vm0 = vcmask 130048   ;;  %s698_s0 = inlined_call_operand.vmem [shape: f32[16,32], index: 0, kind: input, shape index: {}]   ;;  %s699_s1 = inlined_call_operand.vmem [shape: f32[6,32], index: 1, kind: input, shape index: {}]   ;;  %s700_s2 = inlined_call_operand.vmem [shape: f32[16,16], index: 2, kind: input, shape index: {}]   ;;  %s701_s3 = inlined_call_operand.vmem [shape: f32[16,32], index: 3, kind: input, shape index: {}]   ;;  %s702_s4 = inlined_call_operand.vmem [shape: f32[32,128], index: 4, kind: input, shape index: {}]   ;;  %s703_s5 = inlined_call_operand.vmem [shape: f32[1,128], index: 5, kind: input, shape index: {}]   ;;  %s704_s6 = inlined_call_operand.vmem [shape: f32[128,32], index: 6, kind: input, shape index: {}]   ;;  %s705_s7 = inlined_call_operand.hbm [shape: f32[16,32], index: 7, kind: output, shape index: {}]  }
   0x1   :  { %v27_v0 = vld [vmem:[%s698_s0] sm:$0xff]  ;;  %v28_v1 = vld [vmem:[%s698_s0 + $0x8] sm:$0xff] }
   0x2   :  { %v373_v2 = vld [vmem:[%s699_s1] ss:$0 sm:$0xff]  ;;  %v374_v3 = vld [vmem:[%s699_s1 + $0x1] ss:$0 sm:$0xff] }
   0x3   :  { %v39_v4 = vmul.f32 %v373_v2, %v27_v0  ;;  %v40_v5 = vmul.f32 %v373_v2, %v28_v1  ;;  %v47_v6 = vld [vmem:[%s700_s2] sm:$0xff] }
   0x4   :  { %416 = vmatprep.mubr.msk.f32.mxu1 %vm49_vm0, %v47_v6 }
   0x5   :  { %v45_v7 = vadd.f32 %v374_v3, %v39_v4  ;;  %v46_v8 = vadd.f32 %v374_v3, %v40_v5 }
   0x6   :  { %12 = vsyncpa [#allocation3], 0  ;;  %v48_v10 = vld [vmem:[%s700_s2 + $0x8] sm:$0xff]  ;;  %v155_v11 = vld [vmem:[%s702_s4] sm:$0xff]  ;;  %vm166_vm1 = vcmask 261120   ;;  %s540_s11 = smov [#allocation2]  }
   0x7   :  { %v465_v9 = vpack.c.bf16 %v46_v8, %v45_v7  ;;  %v156_v12 = vld [vmem:[%s702_s4 + $0x8] sm:$0xff]  ;;  %v157_v14 = vld [vmem:[%s702_s4 + $0x10] sm:$0xff]  ;;  %v158_v15 = vld [vmem:[%s702_s4 + $0x18] sm:$0xff]  ;;  %s362_s12 = sshll.u32 %s540_s11, 4  ;;  %s363_s12 = int_to_ptr.vmem [resolvable:$true] %s362_s12 }
   0x8   :  { %v469_v13 = vpack.c.bf16 %v156_v12, %v155_v11  ;;  %v473_v16 = vpack.c.bf16 %v158_v15, %v157_v14  ;;  %v258_v17 = vld [vmem:[%s704_s6] sm:$0xff]  ;;  %v259_v18 = vld [vmem:[%s704_s6 + $0x8] sm:$0xff]  ;;  %v260_v19 = vld [vmem:[%s704_s6 + $0x10] sm:$0xff]  ;;  %s516_s13 = scalar_lea.vmem %s363_s12, 256  ;;  %p521_p1 = scmp.lt.s32.totalorder %s363_s12, %s363_s12 }
   0x9   :  { %466 = vmatprep.subr.bf16.mxu1 %v465_v9  ;;  %v477_v20 = vpack.c.bf16 %v259_v18, %v258_v17  ;;  %v261_v21 = vld [vmem:[%s704_s6 + $0x18] sm:$0xff]  ;;  %v262_v23 = vld [vmem:[%s704_s6 + $0x20] sm:$0xff]  ;;  %v263_v24 = vld [vmem:[%s704_s6 + $0x28] sm:$0xff]  ;;  %p517_p0 = scmp.ne.s32.totalorder %s363_s12, %s516_s13  ;;  %p522_p2 = scmp.lt.s32.totalorder %s516_s13, %s516_s13 }
   0xa   :  { %468 = vmatpush3.bf16.msra.mxu1 %v465_v9  ;;  %v481_v22 = vpack.c.bf16 %v261_v21, %v260_v19  ;;  %v485_v25 = vpack.c.bf16 %v263_v24, %v262_v23  ;;  %v377_v26 = vld [vmem:[%s699_s1 + $0x2] ss:$0 sm:$0xff]  ;;  %v138_v28 = vld [vmem:[%s701_s3 + $0x8] sm:$0xff]  ;;  %v378_v34 = vld [vmem:[%s699_s1 + $0x3] ss:$0 sm:$0xff] }
   0xb   :  { %470 = vmatprep.subr.bf16.mxu1 %v469_v13  ;;  %478 = vmatprep.subr.bf16.mxu0 %v477_v20  ;;  %v137_v31 = vld [vmem:[%s701_s3] sm:$0xff]  ;;  %v264_v43 = vld [vmem:[%s704_s6 + $0x30] sm:$0xff]  ;;  %v265_v44 = vld [vmem:[%s704_s6 + $0x38] sm:$0xff]  ;;  %p523_p3 = por %p522_p2, %p521_p1 }
   0xc   :  { %480 = vmatpush3.bf16.msra.mxu0 %v477_v20  ;;  %v379_v38 = vld [vmem:[%s699_s1 + $0x4] ss:$0 sm:$0xff]  ;;  %v489_v45 = vpack.c.bf16 %v265_v44, %v264_v43  ;;  %v267_v47 = vld [vmem:[%s704_s6 + $0x48] sm:$0xff]  ;;  %v268_v49 = vld [vmem:[%s704_s6 + $0x50] sm:$0xff] }
   0xd   :  { %417 = vmatmul.mubr.msk.f32.vlgmr.msra.gmra.mrb[0].mxu1 %vm49_vm0, %v48_v10  ;;  %482 = vmatprep.subr.bf16.mxu0 %v481_v22  ;;  %v266_v46 = vld [vmem:[%s704_s6 + $0x40] sm:$0xff]  ;;  %v269_v50 = vld [vmem:[%s704_s6 + $0x58] sm:$0xff]  ;;  %v271_v53 = vld [vmem:[%s704_s6 + $0x68] sm:$0xff]  ;;  %p524_p4 = pnand %p523_p3, %p517_p0 }
   0xe   :  { %472 = vmatpush3.bf16.msra.mxu1 %v469_v13  ;;  %v493_v48 = vpack.c.bf16 %v267_v47, %v266_v46  ;;  %v497_v51 = vpack.c.bf16 %v269_v50, %v268_v49  ;;  %v270_v52 = vld [vmem:[%s704_s6 + $0x60] sm:$0xff]  ;;  %v272_v55 = vld [vmem:[%s704_s6 + $0x70] sm:$0xff]  ;;  %v273_v56 = vld [vmem:[%s704_s6 + $0x78] sm:$0xff] }
   0xf   :  { %474 = vmatprep.subr.bf16.mxu1 %v473_v16  ;;  %v501_v54 = vpack.c.bf16 %v271_v53, %v270_v52  ;;  %v505_v57 = vpack.c.bf16 %v273_v56, %v272_v55  ;;  %v380_v58 = vld [vmem:[%s703_s5] ss:$0 sm:$0xff]  ;;  %v383_v9 = vld [vmem:[%s699_s1 + $0x5] ss:$0 sm:$0xff] }
  0x10   :  { %484 = vmatpush3.bf16.msra.mxu0 %v481_v22 }
  0x11   :  { %486 = vmatprep.subr.bf16.mxu0 %v485_v25 }
  0x12   :  { %476 = vmatpush3.bf16.msra.mxu1 %v473_v16 }
  0x14   :  { %488 = vmatpush3.bf16.msra.mxu0 %v485_v25 }
  0x15   :  { %490 = vmatprep.subr.bf16.mxu0 %v489_v45 }
  0x18   :  { %492 = vmatpush3.bf16.msra.mxu0 %v489_v45 }
  0x19   :  { %494 = vmatprep.subr.bf16.mxu0 %v493_v48 }
  0x1c   :  { %496 = vmatpush3.bf16.msra.mxu0 %v493_v48 }
  0x1d   :  { %498 = vmatprep.subr.bf16.mxu0 %v497_v51 }
  0x20   :  { %500 = vmatpush3.bf16.msra.mxu0 %v497_v51 }
  0x21   :  { %502 = vmatprep.subr.bf16.mxu0 %v501_v54 }
  0x24   :  { %504 = vmatpush3.bf16.msra.mxu0 %v501_v54 }
  0x25   :  { %506 = vmatprep.subr.bf16.mxu0 %v505_v57 }
  0x28   :  { %508 = vmatpush3.bf16.msra.mxu0 %v505_v57 }
  0xe0   :  { %v418_v27 = vpop.f32.mrb[0].mxu1 }
  0xe1   :  { %v136_v29 = vmul.f32 %v418_v27, %v377_v26  ;;  %v122_v30 = vpop.f32.mrb[1].mxu1 }
  0xe2   :  { %v135_v32 = vmul.f32 %v377_v26, %v122_v30 }
  0xe3   :  { %v140_v33 = vadd.f32 %v138_v28, %v136_v29 }
  0xe4   :  { %v139_v35 = vadd.f32 %v137_v31, %v135_v32 }
  0xe5   :  { %v142_v36 = vadd.f32 %v140_v33, %v46_v8 }
  0xe6   :  { %v141_v37 = vadd.f32 %v139_v35, %v45_v7 }
  0xe7   :  { %v148_v39 = vmul.f32 %v378_v34, %v142_v36 }
  0xe8   :  { %v147_v40 = vmul.f32 %v378_v34, %v141_v37 }
  0xe9   :  { %v154_v42 = vadd.f32 %v379_v38, %v148_v39 }
  0xea   :  { %v153_v41 = vadd.f32 %v379_v38, %v147_v40 }
  0xec   :  { %427 = vmatprep.mubr.msk.f32.mxu1 %vm166_vm1, %v153_v41 }
  0xed   :  { %428 = vmatmul.mubr.msk.f32.vlgmr.msra.gmra.mrb[2].mxu1 %vm166_vm1, %v154_v42 }
 0x1c0   :  { %v429_v59 = vpop.f32.mrb[2].mxu1 }
 0x1c1   :  { %v245_v60 = vadd.f32 %v429_v59, %v380_v58  ;;  %v239_v61 = vpop.f32.mrb[3].mxu1 }
 0x1c2   :  { %v240_v62 = vadd.f32 %v380_v58, %v239_v61 }
 0x1c3   :  { %v251_v63 = vmul.f32 0.70710677, %v245_v60  ;;  %v249_v6 = vmul.f32 0.5, %v245_v60 }
 0x1c4   :  { %v250_v0 = vmul.f32 0.70710677, %v240_v62  ;;  %v248_v4 = vmul.f32 0.5, %v240_v62 }
 0x1c5   :  { %512 = verf.f32 %v251_v63 }
 0x1c6   :  { %514 = verf.f32 %v250_v0 }
 0x1cf   :  { %v513_v1 = vpop.eup %512 }
 0x1d0   :  { %v515_v2 = vpop.eup %514  ;;  %v255_v3 = vadd.f32 1.0, %v513_v1 }
 0x1d1   :  { %v254_v5 = vadd.f32 1.0, %v515_v2 }
 0x1d2   :  { %v257_v8 = vmul.f32 %v255_v3, %v249_v6 }
 0x1d3   :  { %v256_v7 = vmul.f32 %v254_v5, %v248_v4 }
 0x1d5   :  { %462 = vmatprep.mubr.f32.mxu0 %v256_v7 }
 0x1d6   :  { %463 = vmatmul.mubr.f32.vlgmr.msra.gmra.mrb[0].mxu0 %v257_v8 }
 0x2a9   :  { %v464_v10 = vpop.f32.mrb[0].mxu0 }
 0x2aa   :  { %v350_v11 = vadd.f32 %v464_v10, %v383_v9  ;;  %v344_v12 = vpop.f32.mrb[1].mxu0 }
 0x2ab   :  { %v345_v13 = vadd.f32 %v383_v9, %v344_v12 }
 0x2ac   :  { %v354_v14 = vadd.f32 %v350_v11, %v154_v42 }
 0x2ad   :  { %v353_v15 = vadd.f32 %v345_v13, %v153_v41 }
 0x2ae   :  { %356 = vst.msk [vmem:[#allocation2 + $0x8] sm:$0xff] %vm166_vm1, %v354_v14 }
 0x2af   :  { %355 = vst.msk [vmem:[#allocation2] sm:$0xff] %vm166_vm1, %v353_v15 }
 0x2b0   :  { %527 = shalt.err (!%p524_p4)
}
 0x2b1   :  { %s528_s15 = scalar_lea.hbm %s705_s7, 256 }
 0x2b2   :  { %p529_p5 = scmp.ne.s32.totalorder %s705_s7, %s528_s15  ;;  %p532_p6 = scmp.lt.u32.totalorder %s528_s15, %s705_s7 }
 0x2b4   :  { %p534_p7 = pnand %p532_p6, %p529_p5 }
 0x2b6   :  { %537 = shalt.err (!%p534_p7)
}
 0x2b7   :  { %s541_s19 = smov 128   ;;  %s542_s2 = smov 8  }
 0x2b8   :  { %368 = dma.vmem_to_hbm [thread:$0]  %s363_s12, 256, %s705_s7, [#allocation3], %s541_s19, %s541_s19, %s542_s2  }
 0x2b9   :  { %538 = dma.done.wait [#allocation3], 256  }
 0x2ba   :  { %539 = vsyncadd [#allocation3], 4294967040 }
 0x2bb   :  { %372 = vsyncpa [#allocation3], 1 }

</bundles_post_ra>
